<compile_context>
chip_gen: v7x
topology: tpu7x:2x2x1
jax: 0.10.0
libtpu: 0.0.40
codegen_flags: <defaults>
</compile_context>

<pallas_src>
import functools

import jax
import jax.numpy as jnp
from jax.experimental import pallas as pl
from jax.experimental.pallas import tpu as pltpu

IN_UNITS = 1280     # input feature dim
ATT_UNITS = 64      # SelfAttention hidden dim
VAL_UNITS = 128     # WV output dim


def _ga_net_kernel(x_ref,            # (M, 1280) f32, M = b_blk * t
                   wcat_ref,         # (1280, 256) bf16 : [WV | W1 padded]
                   bcat_ref,         # (1, 256) f32     : [bWV | b1 padded]
                   vcol_ref,         # (128, 1) f32     : V zero-padded
                   wprow_ref,        # (1, 128) f32     : Wp^T
                   bv_ref,           # (1, 1) f32 in SMEM
                   bp_ref,           # (1, 1) f32 in SMEM
                   pred_ref,         # (b_blk, 1) f32
                   score_ref,        # (M, 1) f32  sigmoid score (sublane-major)
                   ssum_ref,         # (b_blk, 1) f32
                   *, b_blk, t):
    # One wide MXU pass: (M,1280)bf16 @ (1280,256)bf16 -> f32 accumulation.
    # x arrives as f32 (single HBM read of x); cast to bf16 on the VPU here.
    xb = x_ref[...].astype(jnp.bfloat16)
    y = jnp.dot(xb, wcat_ref[...], preferred_element_type=jnp.float32)
    y = y + bcat_ref[...]                                               # (M, 256)

    xv = y[:, :VAL_UNITS]                                               # (M, 128) value path
    h = jnp.tanh(y[:, VAL_UNITS:])                                      # (M, 128); padded cols -> tanh(0)=0

    # Attention logit on the MXU keeps s in (M,1) sublane-major layout
    # (no lanes<->sublanes relayout before s * xv).
    logit = jnp.dot(h, vcol_ref[...], preferred_element_type=jnp.float32)  # (M, 1)
    s = jax.nn.sigmoid(logit + bv_ref[0, 0])                            # (M, 1)
    score_ref[...] = s

    # Single per-batch T-reduction (one reshape, right at the reduction).
    ctx_u = jnp.sum((s * xv).reshape(b_blk, t, VAL_UNITS), axis=1)      # (b, 128) unnormalized context
    ssum = jnp.sum(s.reshape(b_blk, t, 1), axis=1)                      # (b, 1)

    # Deferred normalization: pred = (ctx_u . wp) / sum_s + bp  (== reference).
    pred = (jnp.sum(ctx_u * wprow_ref[...], axis=-1, keepdims=True) / ssum
            + bp_ref[0, 0])                                             # (b, 1)

    pred_ref[...] = pred
    ssum_ref[...] = ssum


def _choose_b_blk(B, T, target_rows=2048):
    """Pick the batch-block size.

    Constraints: b_blk must be a multiple of 8 OR cover the whole (padded)
    batch, so output blocks (b_blk, 1) obey the sublane tiling rule.  Prefer a
    divisor of B (=> no batch padding / no extra HBM pass over x) and >= 2
    grid steps for larger batches (v7x megacore).  target_rows ~ 2048 keeps
    the f32 x double-buffer around 20 MiB (fits v7x's scoped VMEM); v6e/v5e
    could go larger / must stay near this respectively.
    """
    if B * T <= target_rows and B < 16:
        return B                          # single block covering everything
    b_ideal = max(1, target_rows // T)
    if b_ideal >= B:
        b_ideal = max(1, B // 2)          # keep >= 2 grid steps for megacore
    for cand in range(min(b_ideal, B), 0, -1):
        if B % cand == 0 and (cand % 8 == 0 or cand == B):
            return cand                   # divides B -> no padding needed
    # Fallback: multiple of 8 (tail of B gets zero-padded in the wrapper).
    return max(8, (b_ideal // 8) * 8)


def _pack_params(params):
    """Fuse/pad weights for the kernel (done once, outside the kernel)."""
    w1, b1, v, bv, wv, bwv, wp, bp = params
    pad = VAL_UNITS - ATT_UNITS                                     # 64
    w1p = jnp.pad(w1, ((0, 0), (0, pad)))                           # (1280, 128)
    wcat = jnp.concatenate([wv, w1p], axis=1).astype(jnp.bfloat16)  # (1280, 256)
    b1p = jnp.pad(b1, ((0, 0), (0, pad)))                           # (1, 128)
    bcat = jnp.concatenate([bwv, b1p], axis=1).astype(jnp.float32)  # (1, 256)
    vcol = jnp.pad(v, ((0, pad), (0, 0))).astype(jnp.float32)       # (128, 1)
    wprow = wp.T.astype(jnp.float32)                                # (1, 128)
    return (wcat, bcat, vcol, wprow,
            bv.astype(jnp.float32), bp.astype(jnp.float32))


def ga_net_attn_output(x, params, target_rows=2048):
    """x: (B, T, 1280) float32.

    Returns (pred (B,1), sigmoid score (B,T,1), attention weights (B,T,1)),
    matching the PyTorch module's return order (x, w_a, score).
    """
    B, T, F = x.shape
    assert F == IN_UNITS

    wcat, bcat, vcol, wprow, bv, bp = _pack_params(params)

    b_blk = _choose_b_blk(B, T, target_rows)
    B_pad = ((B + b_blk - 1) // b_blk) * b_blk
    M_blk = b_blk * T
    num_blocks = B_pad // b_blk

    # Flatten batch/time (free metadata reshape) and feed f32 directly: the
    # bf16 cast happens inside the kernel, so x is read from HBM exactly once.
    x2d = x.reshape(B * T, F)
    if B_pad != B:
        # Only hit when no multiple-of-8 divisor of B exists (extra HBM pass).
        x2d = jnp.pad(x2d, ((0, (B_pad - B) * T), (0, 0)))

    kernel = functools.partial(_ga_net_kernel, b_blk=b_blk, t=T)

    const2 = lambda arr: pl.BlockSpec(arr.shape, lambda b: (0, 0))
    smem = pl.BlockSpec(memory_space=pltpu.MemorySpace.SMEM)

    grid_spec = pltpu.PrefetchScalarGridSpec(
        num_scalar_prefetch=0,
        grid=(num_blocks,),
        in_specs=[
            pl.BlockSpec((M_blk, F), lambda b: (b, 0)),     # x slab (f32)
            const2(wcat), const2(bcat), const2(vcol), const2(wprow),
            smem, smem,                                     # bv, bp scalars
        ],
        out_specs=[
            pl.BlockSpec((b_blk, 1), lambda b: (b, 0)),     # pred
            pl.BlockSpec((M_blk, 1), lambda b: (b, 0)),     # sigmoid score
            pl.BlockSpec((b_blk, 1), lambda b: (b, 0)),     # per-batch score sum
        ],
    )

    out_shapes = (
        jax.ShapeDtypeStruct((B_pad, 1), jnp.float32),
        jax.ShapeDtypeStruct((B_pad * T, 1), jnp.float32),
        jax.ShapeDtypeStruct((B_pad, 1), jnp.float32),
    )

    pred, score_flat, ssum = pl.pallas_call(
        kernel,
        out_shape=out_shapes,
        grid_spec=grid_spec,
        compiler_params=pltpu.CompilerParams(
            dimension_semantics=("parallel",),
            vmem_limit_bytes=48 * 1024 * 1024),
    )(x2d, wcat, bcat, vcol, wprow, bv, bp)

    pred = pred[:B]                                 # (B, 1)
    score = score_flat.reshape(B_pad, T)[:B]        # (B, T)
    weights = score / ssum[:B]                      # (B, T) - one cheap XLA divide
    return pred, score[..., None], weights[..., None]


def init_params(key):
    """Deterministic synthetic weights (stored as (in, out): y = x @ W + b)."""
    ks = jax.random.split(key, 8)
    scale = 0.02
    w1 = scale * jax.random.normal(ks[0], (IN_UNITS, ATT_UNITS), jnp.float32)
    b1 = scale * jax.random.normal(ks[1], (1, ATT_UNITS), jnp.float32)
    v = scale * jax.random.normal(ks[2], (ATT_UNITS, 1), jnp.float32)
    bv = scale * jax.random.normal(ks[3], (1, 1), jnp.float32)
    wv = scale * jax.random.normal(ks[4], (IN_UNITS, VAL_UNITS), jnp.float32)
    bwv = scale * jax.random.normal(ks[5], (1, VAL_UNITS), jnp.float32)
    wp = scale * jax.random.normal(ks[6], (VAL_UNITS, 1), jnp.float32)
    bp = scale * jax.random.normal(ks[7], (1, 1), jnp.float32)
    return (w1, b1, v, bv, wv, bwv, wp, bp)


def reference(x, params):
    """Pure-JAX (f32) reference mirroring the PyTorch forward."""
    w1, b1, v, bv, wv, bwv, wp, bp = params
    x_v = x @ wv + bwv                                       # (B, T, 128)
    score = jax.nn.sigmoid(jnp.tanh(x @ w1 + b1) @ v + bv)   # (B, T, 1)
    sum_score = jnp.sum(score, axis=1, keepdims=True)
    attn_w = score / sum_score
    ctx = jnp.sum(attn_w * x_v, axis=1)                      # (B, 128)
    pred = ctx @ wp + bp                                     # (B, 1)
    return pred, score, attn_w


def _check(x, params, atol=2e-2, rtol=2e-2):
    pred, score, attn_w = jax.block_until_ready(ga_net_attn_output(x, params))
    ref_pred, ref_score, ref_w = reference(x, params)
    B, T, _ = x.shape
    assert pred.shape == (B, 1)
    assert score.shape == (B, T, 1)
    assert attn_w.shape == (B, T, 1)
    # bf16 MXU operands with f32 accumulation -> slightly loosened tolerances.
    assert jnp.allclose(pred, ref_pred, atol=atol, rtol=rtol)
    assert jnp.allclose(score, ref_score, atol=atol, rtol=rtol)
    assert jnp.allclose(attn_w, ref_w, atol=atol, rtol=rtol)


if __name__ == "__main__":
    key = jax.random.PRNGKey(0)
    k_x, k_p = jax.random.split(key)
    params = init_params(k_p)

    # Primary small test (single block, grid = 1).
    B, T = 2, 8
    x = jax.random.normal(k_x, (B, T, IN_UNITS), jnp.float32)
    _check(x, params)

    # Secondary test exercising the multi-block (grid > 1, b_blk % 8 == 0) path.
    B2, T2 = 32, 8
    x2 = jax.random.normal(jax.random.PRNGKey(1), (B2, T2, IN_UNITS), jnp.float32)
    _check(x2, params)

    print("KERNEL_OK")
</pallas_src>

<mosaic_0001>
module attributes {stable_mosaic.version = 11 : i64} {
  func.func @_ga_net_kernel(%arg0: i32, %arg1: memref<16x1280xf32, #tpu.memory_space<vmem>>, %arg2: memref<1280x256xbf16, #tpu.memory_space<vmem>>, %arg3: memref<1x256xf32, #tpu.memory_space<vmem>>, %arg4: memref<128x1xf32, #tpu.memory_space<vmem>>, %arg5: memref<1x128xf32, #tpu.memory_space<vmem>>, %arg6: memref<1x1xf32, #tpu.memory_space<smem>>, %arg7: memref<1x1xf32, #tpu.memory_space<smem>>, %arg8: memref<2x1xf32, #tpu.memory_space<vmem>>, %arg9: memref<16x1xf32, #tpu.memory_space<vmem>>, %arg10: memref<2x1xf32, #tpu.memory_space<vmem>>) attributes {dimension_semantics = [#tpu.dimension_semantics<parallel>], iteration_bounds = array<i64: 1>, scalar_prefetch = 0 : i64, scratch_operands = 0 : i64, tpu.core_type = #tpu.core_type<tc>, window_params = [{transform_indices = @transform_0, window_bounds = array<i64: 16, 1280>}, {pipeline_mode = #tpu.pipeline_mode<synchronous>, transform_indices = @transform_1, window_bounds = array<i64: 1280, 256>}, {pipeline_mode = #tpu.pipeline_mode<synchronous>, transform_indices = @transform_2, window_bounds = array<i64: 1, 256>}, {pipeline_mode = #tpu.pipeline_mode<synchronous>, transform_indices = @transform_3, window_bounds = array<i64: 128, 1>}, {pipeline_mode = #tpu.pipeline_mode<synchronous>, transform_indices = @transform_4, window_bounds = array<i64: 1, 128>}, {transform_indices = @transform_5, window_bounds = array<i64: 1, 1>}, {transform_indices = @transform_6, window_bounds = array<i64: 1, 1>}, {transform_indices = @transform_7, window_bounds = array<i64: 2, 1>}, {transform_indices = @transform_8, window_bounds = array<i64: 16, 1>}, {transform_indices = @transform_9, window_bounds = array<i64: 2, 1>}]} {
    %c0 = arith.constant 0 : index
    %c0_0 = arith.constant 0 : index
    %0 = vector.load %arg1[%c0, %c0_0] : memref<16x1280xf32, #tpu.memory_space<vmem>>, vector<16x1280xf32>
    %1 = arith.truncf %0 : vector<16x1280xf32> to vector<16x1280xbf16>
    %c0_1 = arith.constant 0 : index
    %c0_2 = arith.constant 0 : index
    %2 = vector.load %arg2[%c0_1, %c0_2] : memref<1280x256xbf16, #tpu.memory_space<vmem>>, vector<1280x256xbf16>
    %cst = arith.constant dense<0.000000e+00> : vector<16x256xf32>
    %3 = tpu.matmul %1, %2, %cst {dimension_numbers = #tpu.dot_dimension_numbers<[1], [0], [0], [1], [0, 0, 1, 1], [], []>} : vector<16x1280xbf16>, vector<1280x256xbf16>, vector<16x256xf32> -> vector<16x256xf32>
    %c0_3 = arith.constant 0 : index
    %c0_4 = arith.constant 0 : index
    %4 = vector.load %arg3[%c0_3, %c0_4] : memref<1x256xf32, #tpu.memory_space<vmem>>, vector<1x256xf32>
    %5 = vector.broadcast %4 : vector<1x256xf32> to vector<16x256xf32>
    %6 = arith.addf %3, %5 : vector<16x256xf32>
    %7 = vector.extract_strided_slice %6 {offsets = [0, 0], sizes = [16, 128], strides = [1, 1]} : vector<16x256xf32> to vector<16x128xf32>
    %8 = vector.extract_strided_slice %6 {offsets = [0, 128], sizes = [16, 128], strides = [1, 1]} : vector<16x256xf32> to vector<16x128xf32>
    %9 = math.tanh %8 : vector<16x128xf32>
    %c0_5 = arith.constant 0 : index
    %c0_6 = arith.constant 0 : index
    %10 = vector.load %arg4[%c0_5, %c0_6] : memref<128x1xf32, #tpu.memory_space<vmem>>, vector<128x1xf32>
    %cst_7 = arith.constant dense<0.000000e+00> : vector<16x1xf32>
    %11 = tpu.matmul %9, %10, %cst_7 {dimension_numbers = #tpu.dot_dimension_numbers<[1], [0], [0], [1], [0, 0, 1, 1], [], []>} : vector<16x128xf32>, vector<128x1xf32>, vector<16x1xf32> -> vector<16x1xf32>
    %c0_8 = arith.constant 0 : index
    %c0_9 = arith.constant 0 : index
    %12 = memref.load %arg6[%c0_8, %c0_9] : memref<1x1xf32, #tpu.memory_space<smem>>
    %13 = vector.broadcast %12 : f32 to vector<16x1xf32>
    %14 = arith.addf %11, %13 : vector<16x1xf32>
    %15 = arith.negf %14 : vector<16x1xf32>
    %16 = math.exp %15 : vector<16x1xf32>
    %cst_10 = arith.constant 1.000000e+00 : f32
    %17 = vector.broadcast %cst_10 : f32 to vector<16x1xf32>
    %18 = arith.addf %17, %16 : vector<16x1xf32>
    %19 = arith.divf %17, %18 : vector<16x1xf32>
    %c0_11 = arith.constant 0 : index
    %c0_12 = arith.constant 0 : index
    %20 = vector.load %arg9[%c0_11, %c0_12] : memref<16x1xf32, #tpu.memory_space<vmem>>, vector<16x1xf32>
    tpu.vector_store %arg9[%c0_11, %c0_12], %19 {strides = array<i32>} : memref<16x1xf32, #tpu.memory_space<vmem>>, vector<16x1xf32>,
    %21 = vector.broadcast %19 : vector<16x1xf32> to vector<16x128xf32>
    %22 = arith.mulf %21, %7 : vector<16x128xf32>
    %23 = vector.shape_cast %22 : vector<16x128xf32> to vector<2x8x128xf32>
    %cst_13 = arith.constant dense<0.000000e+00> : vector<2x128xf32>
    %24 = vector.multi_reduction <add>, %23, %cst_13 [1] : vector<2x8x128xf32> to vector<2x128xf32>
    %25 = vector.shape_cast %19 : vector<16x1xf32> to vector<2x8x1xf32>
    %cst_14 = arith.constant dense<0.000000e+00> : vector<2x1xf32>
    %26 = vector.multi_reduction <add>, %25, %cst_14 [1] : vector<2x8x1xf32> to vector<2x1xf32>
    %c0_15 = arith.constant 0 : index
    %c0_16 = arith.constant 0 : index
    %27 = vector.load %arg5[%c0_15, %c0_16] : memref<1x128xf32, #tpu.memory_space<vmem>>, vector<1x128xf32>
    %28 = vector.broadcast %27 : vector<1x128xf32> to vector<2x128xf32>
    %29 = arith.mulf %24, %28 : vector<2x128xf32>
    %cst_17 = arith.constant dense<0.000000e+00> : vector<2xf32>
    %30 = vector.multi_reduction <add>, %29, %cst_17 [1] : vector<2x128xf32> to vector<2xf32>
    %31 = vector.shape_cast %30 : vector<2xf32> to vector<2x1xf32>
    %32 = arith.divf %31, %26 : vector<2x1xf32>
    %c0_18 = arith.constant 0 : index
    %c0_19 = arith.constant 0 : index
    %33 = memref.load %arg7[%c0_18, %c0_19] : memref<1x1xf32, #tpu.memory_space<smem>>
    %34 = vector.broadcast %33 : f32 to vector<2x1xf32>
    %35 = arith.addf %32, %34 : vector<2x1xf32>
    %c0_20 = arith.constant 0 : index
    %c0_21 = arith.constant 0 : index
    %36 = vector.load %arg8[%c0_20, %c0_21] : memref<2x1xf32, #tpu.memory_space<vmem>>, vector<2x1xf32>
    tpu.vector_store %arg8[%c0_20, %c0_21], %35 {strides = array<i32>} : memref<2x1xf32, #tpu.memory_space<vmem>>, vector<2x1xf32>,
    %c0_22 = arith.constant 0 : index
    %c0_23 = arith.constant 0 : index
    %37 = vector.load %arg10[%c0_22, %c0_23] : memref<2x1xf32, #tpu.memory_space<vmem>>, vector<2x1xf32>
    tpu.vector_store %arg10[%c0_22, %c0_23], %26 {strides = array<i32>} : memref<2x1xf32, #tpu.memory_space<vmem>>, vector<2x1xf32>,
    return
  }
  func.func @transform_0(%arg0: i32) -> (i32, i32) {
    %c0_i32 = arith.constant 0 : i32
    %c0_i32_0 = arith.constant 0 : i32
    return %arg0, %c0_i32 : i32, i32
  }
  func.func @transform_1(%arg0: i32) -> (i32, i32) {
    %c0_i32 = arith.constant 0 : i32
    %c0_i32_0 = arith.constant 0 : i32
    %c0_i32_1 = arith.constant 0 : i32
    return %c0_i32, %c0_i32_0 : i32, i32
  }
  func.func @transform_2(%arg0: i32) -> (i32, i32) {
    %c0_i32 = arith.constant 0 : i32
    %c0_i32_0 = arith.constant 0 : i32
    %c0_i32_1 = arith.constant 0 : i32
    return %c0_i32, %c0_i32_0 : i32, i32
  }
  func.func @transform_3(%arg0: i32) -> (i32, i32) {
    %c0_i32 = arith.constant 0 : i32
    %c0_i32_0 = arith.constant 0 : i32
    %c0_i32_1 = arith.constant 0 : i32
    return %c0_i32, %c0_i32_0 : i32, i32
  }
  func.func @transform_4(%arg0: i32) -> (i32, i32) {
    %c0_i32 = arith.constant 0 : i32
    %c0_i32_0 = arith.constant 0 : i32
    %c0_i32_1 = arith.constant 0 : i32
    return %c0_i32, %c0_i32_0 : i32, i32
  }
  func.func @transform_5(%arg0: i32) -> (i32, i32) {
    %c0_i32 = arith.constant 0 : i32
    %c0_i32_0 = arith.constant 0 : i32
    %c0_i32_1 = arith.constant 0 : i32
    return %c0_i32, %c0_i32_0 : i32, i32
  }
  func.func @transform_6(%arg0: i32) -> (i32, i32) {
    %c0_i32 = arith.constant 0 : i32
    %c0_i32_0 = arith.constant 0 : i32
    %c0_i32_1 = arith.constant 0 : i32
    return %c0_i32, %c0_i32_0 : i32, i32
  }
  func.func @transform_7(%arg0: i32) -> (i32, i32) {
    %c0_i32 = arith.constant 0 : i32
    %c0_i32_0 = arith.constant 0 : i32
    return %arg0, %c0_i32 : i32, i32
  }
  func.func @transform_8(%arg0: i32) -> (i32, i32) {
    %c0_i32 = arith.constant 0 : i32
    %c0_i32_0 = arith.constant 0 : i32
    return %arg0, %c0_i32 : i32, i32
  }
  func.func @transform_9(%arg0: i32) -> (i32, i32) {
    %c0_i32 = arith.constant 0 : i32
    %c0_i32_0 = arith.constant 0 : i32
    return %arg0, %c0_i32 : i32, i32
  }
}

</mosaic_0001>

<bundles_post_ra>
// kernel: tpu_custom_call.1
= control target key start
LH: loop header
LB: loop body
LE: loop exit
PB: predicated region body
PF: predicated region fallthrough
CT: control target
= control target key end

     0   :  { %17 = vsyncpa [#allocation5], 0  ;;  %s2204_s0 = inlined_call_operand.hbm [shape: f32[16,1280], index: 0, kind: input, shape index: {}]   ;;  %s2205_s1 = inlined_call_operand.hbm [shape: bf16[1280,256], index: 1, kind: input, shape index: {}]   ;;  %s2206_s2 = inlined_call_operand.vmem [shape: f32[1,256], index: 2, kind: input, shape index: {}]   ;;  %s2207_s3 = inlined_call_operand.vmem [shape: f32[128,1], index: 3, kind: input, shape index: {}]   ;;  %s2208_s4 = inlined_call_operand.vmem [shape: f32[1,128], index: 4, kind: input, shape index: {}]   ;;  %s2209_s5 = inlined_call_operand.<no memory space> [shape: f32[1,1], index: 5, kind: input, shape index: {}]   ;;  %s2210_s6 = inlined_call_operand.<no memory space> [shape: f32[1,1], index: 6, kind: input, shape index: {}]   ;;  %s2211_s7 = inlined_call_operand.vmem [shape: f32[2,1], index: 7, kind: output, shape index: {0}]   ;;  %s2212_s8 = inlined_call_operand.vmem [shape: f32[16,1], index: 8, kind: output, shape index: {1}]   ;;  %s2213_s9 = inlined_call_operand.vmem [shape: f32[2,1], index: 9, kind: output, shape index: {2}]  }
   0x1   :  { %18 = vsyncpa [#allocation7], 0  ;;  %s2047_s30 = smov [#allocation4]   ;;  %s1999_s13 = scalar_lea.hbm %s2204_s0, 2560 }
   0x2   :  { %s24_s10 = sshll.u32 %s2047_s30, 4  ;;  %p2000_p0 = scmp.ne.s32.totalorder %s2204_s0, %s1999_s13  ;;  %s25_s10 = int_to_ptr.vmem [resolvable:$true] %s24_s10 }
   0x3   :  { %p2003_p1 = scmp.lt.u32.totalorder %s1999_s13, %s2204_s0 }
   0x5   :  { %p2005_p2 = pnand %p2003_p1, %p2000_p0 }
   0x7   :  { %2008 = shalt.err (!%p2005_p2)
}
   0x8   :  { %s2009_s18 = scalar_lea.vmem %s25_s10, 2560  ;;  %p2014_p4 = scmp.lt.s32.totalorder %s25_s10, %s25_s10 }
   0x9   :  { %p2010_p3 = scmp.ne.s32.totalorder %s25_s10, %s2009_s18  ;;  %p2015_p5 = scmp.lt.s32.totalorder %s2009_s18, %s2009_s18 }
   0xb   :  { %p2016_p6 = por %p2015_p5, %p2014_p4 }
   0xd   :  { %p2017_p7 = pnand %p2016_p6, %p2010_p3 }
   0xf   :  { %2020 = shalt.err (!%p2017_p7)
}
  0x10   :  { %s2048_s19 = smov 1280   ;;  %s2049_s20 = smov 80  }
  0x11   :  { %30 = dma.hbm_to_vmem [thread:$0]  %s2204_s0, 2560, %s25_s10, [#allocation5], %s2048_s19, %s2048_s19, %s2049_s20  }
  0x12   :  { %s2050_s23 = smov [#allocation6]   ;;  %s2021_s27 = scalar_lea.hbm %s2205_s1, 20480 }
  0x13   :  { %s36_s24 = sshll.u32 %s2050_s23, 4  ;;  %p2022_p8 = scmp.ne.s32.totalorder %s2205_s1, %s2021_s27  ;;  %s37_s24 = int_to_ptr.vmem [resolvable:$true] %s36_s24 }
  0x14   :  { %p2025_p9 = scmp.lt.u32.totalorder %s2021_s27, %s2205_s1 }
  0x16   :  { %p2027_p10 = pnand %p2025_p9, %p2022_p8 }
  0x18   :  { %2030 = shalt.err (!%p2027_p10)
}
  0x19   :  { %s2031_s12 = scalar_lea.vmem %s37_s24, 20480  ;;  %p2036_p12 = scmp.lt.s32.totalorder %s37_s24, %s37_s24 }
  0x1a   :  { %p2032_p11 = scmp.ne.s32.totalorder %s37_s24, %s2031_s12  ;;  %p2037_p13 = scmp.lt.s32.totalorder %s2031_s12, %s2031_s12 }
  0x1c   :  { %p2038_p0 = por %p2037_p13, %p2036_p12 }
  0x1e   :  { %p2039_p1 = pnand %p2038_p0, %p2032_p11 }
  0x20   :  { %2042 = shalt.err (!%p2039_p1)
}
  0x21   :  { %s2051_s0 = smov 128   ;;  %s2052_s10 = smov 8  }
  0x22   :  { %42 = dma.hbm_to_vmem [thread:$0]  %s2205_s1, 20480, %s37_s24, [#allocation7], %s2051_s0, %s2051_s0, %s2052_s10  }
  0x23   :  { %2043 = dma.done.wait [#allocation5], 2560  }
  0x24   :  { %2044 = vsyncadd [#allocation5], 4294964736 }
  0x25   :  { %2045 = dma.done.wait [#allocation7], 20480  }
  0x26   :  { %2046 = vsyncadd [#allocation7], 4294946816  ;;  %v1745_v0 = vld [vmem:[#allocation6 + $0x4] ss:$8 sps:$4 sm:$0xff]   ;;  %v1749_v2 = vld [vmem:[#allocation6] ss:$8 sps:$4 sm:$0xff]  }
  0x27   :  { %v1747_v1 = vld [vmem:[#allocation6 + $0x204] ss:$8 sps:$4 sm:$0xff]   ;;  %1061 = vmatprep.subr.bf16.mxu1 %v1745_v0  ;;  %v1750_v3 = vld [vmem:[#allocation6 + $0x200] ss:$8 sps:$4 sm:$0xff]   ;;  %v1751_v4 = vld [vmem:[#allocation6 + $0x14] ss:$8 sps:$4 sm:$0xff]  }
  0x28   :  { %1147 = vmatprep.subr.bf16.mxu0 %v1747_v1  ;;  %1062 = vmatpush1.bf16.msra.mxu1 %v1749_v2  ;;  %v1753_v5 = vld [vmem:[#allocation6 + $0x214] ss:$8 sps:$4 sm:$0xff]   ;;  %v1755_v6 = vld [vmem:[#allocation6 + $0x10] ss:$8 sps:$4 sm:$0xff]   ;;  %v1757_v8 = vld [vmem:[#allocation6 + $0x24] ss:$8 sps:$4 sm:$0xff]  }
  0x29   :  { %1148 = vmatpush1.bf16.msra.mxu0 %v1750_v3  ;;  %1063 = vmatprep.subr.bf16.mxu1 %v1751_v4  ;;  %v1756_v7 = vld [vmem:[#allocation6 + $0x210] ss:$8 sps:$4 sm:$0xff]   ;;  %v1759_v9 = vld [vmem:[#allocation6 + $0x224] ss:$8 sps:$4 sm:$0xff]   ;;  %v1761_v10 = vld [vmem:[#allocation6 + $0x20] ss:$8 sps:$4 sm:$0xff]  }
  0x2a   :  { %1149 = vmatprep.subr.bf16.mxu0 %v1753_v5  ;;  %v1762_v11 = vld [vmem:[#allocation6 + $0x220] ss:$8 sps:$4 sm:$0xff]   ;;  %v1763_v12 = vld [vmem:[#allocation6 + $0x34] ss:$8 sps:$4 sm:$0xff]   ;;  %v1767_v14 = vld [vmem:[#allocation6 + $0x30] ss:$8 sps:$4 sm:$0xff]  }
  0x2b   :  { %v1765_v13 = vld [vmem:[#allocation6 + $0x234] ss:$8 sps:$4 sm:$0xff]   ;;  %v1768_v15 = vld [vmem:[#allocation6 + $0x230] ss:$8 sps:$4 sm:$0xff]   ;;  %v1769_v16 = vld [vmem:[#allocation6 + $0x44] ss:$8 sps:$4 sm:$0xff]  }
  0x2c   :  { %1064 = vmatpush1.bf16.msra.mxu1 %v1755_v6  ;;  %v1771_v17 = vld [vmem:[#allocation6 + $0x244] ss:$8 sps:$4 sm:$0xff]   ;;  %v1773_v18 = vld [vmem:[#allocation6 + $0x40] ss:$8 sps:$4 sm:$0xff]   ;;  %v1775_v20 = vld [vmem:[#allocation6 + $0x54] ss:$8 sps:$4 sm:$0xff]  }
  0x2d   :  { %1150 = vmatpush1.bf16.msra.mxu0 %v1756_v7  ;;  %1065 = vmatprep.subr.bf16.mxu1 %v1757_v8  ;;  %v1774_v19 = vld [vmem:[#allocation6 + $0x240] ss:$8 sps:$4 sm:$0xff]   ;;  %v1777_v21 = vld [vmem:[#allocation6 + $0x254] ss:$8 sps:$4 sm:$0xff]   ;;  %v1779_v22 = vld [vmem:[#allocation6 + $0x50] ss:$8 sps:$4 sm:$0xff]  }
  0x2e   :  { %1151 = vmatprep.subr.bf16.mxu0 %v1759_v9  ;;  %v1780_v23 = vld [vmem:[#allocation6 + $0x250] ss:$8 sps:$4 sm:$0xff]   ;;  %v1781_v24 = vld [vmem:[#allocation6 + $0x64] ss:$8 sps:$4 sm:$0xff]   ;;  %v1785_v26 = vld [vmem:[#allocation6 + $0x60] ss:$8 sps:$4 sm:$0xff]  }
  0x2f   :  { %v1783_v25 = vld [vmem:[#allocation6 + $0x264] ss:$8 sps:$4 sm:$0xff]   ;;  %v1786_v27 = vld [vmem:[#allocation6 + $0x260] ss:$8 sps:$4 sm:$0xff]   ;;  %v1787_v28 = vld [vmem:[#allocation6 + $0x74] ss:$8 sps:$4 sm:$0xff]  }
  0x30   :  { %1066 = vmatpush1.bf16.msra.mxu1 %v1761_v10  ;;  %v1789_v29 = vld [vmem:[#allocation6 + $0x274] ss:$8 sps:$4 sm:$0xff]   ;;  %v1791_v30 = vld [vmem:[#allocation6 + $0x70] ss:$8 sps:$4 sm:$0xff]   ;;  %v1793_v32 = vld [vmem:[#allocation6 + $0x84] ss:$8 sps:$4 sm:$0xff]  }
  0x31   :  { %1152 = vmatpush1.bf16.msra.mxu0 %v1762_v11  ;;  %1067 = vmatprep.subr.bf16.mxu1 %v1763_v12  ;;  %v1792_v31 = vld [vmem:[#allocation6 + $0x270] ss:$8 sps:$4 sm:$0xff]   ;;  %v1795_v33 = vld [vmem:[#allocation6 + $0x284] ss:$8 sps:$4 sm:$0xff]   ;;  %v1797_v34 = vld [vmem:[#allocation6 + $0x80] ss:$8 sps:$4 sm:$0xff]  }
  0x32   :  { %1153 = vmatprep.subr.bf16.mxu0 %v1765_v13  ;;  %v1798_v35 = vld [vmem:[#allocation6 + $0x280] ss:$8 sps:$4 sm:$0xff]   ;;  %v1799_v36 = vld [vmem:[#allocation6 + $0x94] ss:$8 sps:$4 sm:$0xff]   ;;  %v1803_v38 = vld [vmem:[#allocation6 + $0x90] ss:$8 sps:$4 sm:$0xff]  }
  0x33   :  { %v1801_v37 = vld [vmem:[#allocation6 + $0x294] ss:$8 sps:$4 sm:$0xff]   ;;  %v1804_v39 = vld [vmem:[#allocation6 + $0x290] ss:$8 sps:$4 sm:$0xff]   ;;  %v1805_v40 = vld [vmem:[#allocation6 + $0xa4] ss:$8 sps:$4 sm:$0xff]  }
  0x34   :  { %1068 = vmatpush1.bf16.msra.mxu1 %v1767_v14  ;;  %v1807_v41 = vld [vmem:[#allocation6 + $0x2a4] ss:$8 sps:$4 sm:$0xff]   ;;  %v1809_v42 = vld [vmem:[#allocation6 + $0xa0] ss:$8 sps:$4 sm:$0xff]   ;;  %v1811_v44 = vld [vmem:[#allocation6 + $0xb4] ss:$8 sps:$4 sm:$0xff]  }
  0x35   :  { %1154 = vmatpush1.bf16.msra.mxu0 %v1768_v15  ;;  %1069 = vmatprep.subr.bf16.mxu1 %v1769_v16  ;;  %v1810_v43 = vld [vmem:[#allocation6 + $0x2a0] ss:$8 sps:$4 sm:$0xff]   ;;  %v1813_v45 = vld [vmem:[#allocation6 + $0x2b4] ss:$8 sps:$4 sm:$0xff]   ;;  %v1815_v46 = vld [vmem:[#allocation6 + $0xb0] ss:$8 sps:$4 sm:$0xff]  }
  0x36   :  { %1155 = vmatprep.subr.bf16.mxu0 %v1771_v17  ;;  %v1816_v47 = vld [vmem:[#allocation6 + $0x2b0] ss:$8 sps:$4 sm:$0xff]   ;;  %v60_v48 = vld [vmem:[#allocation4 + $0x8] sm:$0xff]  ;;  %v1823_v58 = vld [vmem:[#allocation6 + $0xd4] ss:$8 sps:$4 sm:$0xff]   ;;  %vm1383_vm0 = vcmask 7168  }
  0x37   :  { %v70_v49 = vld [vmem:[#allocation4 + $0x58] sm:$0xff]  ;;  %v1817_v50 = vld [vmem:[#allocation6 + $0xc4] ss:$8 sps:$4 sm:$0xff]   ;;  %v1821_v56 = vld [vmem:[#allocation6 + $0xc0] ss:$8 sps:$4 sm:$0xff]   ;;  %vm1436_vm1 = vcmask 1041409  }
  0x38   :  { %1070 = vmatpush1.bf16.msra.mxu1 %v1773_v18  ;;  %v1819_v51 = vld [vmem:[#allocation6 + $0x2c4] ss:$8 sps:$4 sm:$0xff]   ;;  %v80_v52 = vpack.c.bf16 %v70_v49, %v60_v48  ;;  %v74_v54 = vld [vmem:[#allocation4 + $0x78] sm:$0xff]  ;;  %v1822_v57 = vld [vmem:[#allocation6 + $0x2c0] ss:$8 sps:$4 sm:$0xff]   ;;  %vm1452_vm2 = vcmask 1024  }
  0x39   :  { %1156 = vmatpush1.bf16.msra.mxu0 %v1774_v19  ;;  %1071 = vmatprep.subr.bf16.mxu1 %v1775_v20  ;;  %v64_v53 = vld [vmem:[#allocation4 + $0x28] sm:$0xff]  ;;  %v1825_v59 = vld [vmem:[#allocation6 + $0x2d4] ss:$8 sps:$4 sm:$0xff]   ;;  %v1827_v60 = vld [vmem:[#allocation6 + $0xd0] ss:$8 sps:$4 sm:$0xff]   ;;  %vm1439_vm3 = vcmask 1041408  }
  0x3a   :  { %1157 = vmatprep.subr.bf16.mxu0 %v1777_v21  ;;  %1093 = vmatprep.mubr.bf16.mxu1 %v80_v52  ;;  %v84_v55 = vpack.c.bf16 %v74_v54, %v64_v53  ;;  %v1828_v61 = vld [vmem:[#allocation6 + $0x2d0] ss:$8 sps:$4 sm:$0xff]   ;;  %v1829_v62 = vld [vmem:[#allocation6 + $0xe4] ss:$8 sps:$4 sm:$0xff]   ;;  %v1833_v0 = vld [vmem:[#allocation6 + $0xe0] ss:$8 sps:$4 sm:$0xff]  }
  0x3b   :  { %v1831_v63 = vld [vmem:[#allocation6 + $0x2e4] ss:$8 sps:$4 sm:$0xff]   ;;  %v1834_v1 = vld [vmem:[#allocation6 + $0x2e0] ss:$8 sps:$4 sm:$0xff]   ;;  %v1835_v2 = vld [vmem:[#allocation6 + $0xf4] ss:$8 sps:$4 sm:$0xff]  }
  0x3c   :  { %1072 = vmatpush1.bf16.msra.mxu1 %v1779_v22  ;;  %1179 = vmatprep.mubr.bf16.mxu0 %v84_v55  ;;  %v1837_v3 = vld [vmem:[#allocation6 + $0x2f4] ss:$8 sps:$4 sm:$0xff]   ;;  %v1839_v4 = vld [vmem:[#allocation6 + $0xf0] ss:$8 sps:$4 sm:$0xff]   ;;  %v59_v6 = vld [vmem:[#allocation4] sm:$0xff] }
  0x3d   :  { %1158 = vmatpush1.bf16.msra.mxu0 %v1780_v23  ;;  %1073 = vmatprep.subr.bf16.mxu1 %v1781_v24  ;;  %v1840_v5 = vld [vmem:[#allocation6 + $0x2f0] ss:$8 sps:$4 sm:$0xff]   ;;  %v1843_v7 = vld [vmem:[#allocation6 + $0x104] ss:$8 sps:$4 sm:$0xff]   ;;  %v1841_v12 = vld [vmem:[#allocation6 + $0x100] ss:$8 sps:$4 sm:$0xff]  }
  0x3e   :  { %1159 = vmatprep.subr.bf16.mxu0 %v1783_v25  ;;  %v69_v8 = vld [vmem:[#allocation4 + $0x50] sm:$0xff]  ;;  %v63_v9 = vld [vmem:[#allocation4 + $0x20] sm:$0xff] }
  0x3f   :  { %v73_v10 = vld [vmem:[#allocation4 + $0x70] sm:$0xff]  ;;  %v1846_v11 = vld [vmem:[#allocation6 + $0x304] ss:$8 sps:$4 sm:$0xff]   ;;  %v1844_v13 = vld [vmem:[#allocation6 + $0x300] ss:$8 sps:$4 sm:$0xff]   ;;  %v79_v14 = vpack.c.bf16 %v69_v8, %v59_v6 }
  0x40   :  { %1074 = vmatpush1.bf16.msra.mxu1 %v1785_v26  ;;  %v83_v15 = vpack.c.bf16 %v73_v10, %v63_v9  ;;  %v1849_v16 = vld [vmem:[#allocation6 + $0x114] ss:$8 sps:$4 sm:$0xff]   ;;  %v1847_v18 = vld [vmem:[#allocation6 + $0x110] ss:$8 sps:$4 sm:$0xff]   ;;  %v1855_v20 = vld [vmem:[#allocation6 + $0x124] ss:$8 sps:$4 sm:$0xff]  }
  0x41   :  { %1160 = vmatpush1.bf16.msra.mxu0 %v1786_v27  ;;  %1075 = vmatprep.subr.bf16.mxu1 %v1787_v28  ;;  %v1852_v17 = vld [vmem:[#allocation6 + $0x314] ss:$8 sps:$4 sm:$0xff]   ;;  %v1850_v19 = vld [vmem:[#allocation6 + $0x310] ss:$8 sps:$4 sm:$0xff]   ;;  %v1858_v21 = vld [vmem:[#allocation6 + $0x324] ss:$8 sps:$4 sm:$0xff]  }
  0x42   :  { %1161 = vmatprep.subr.bf16.mxu0 %v1789_v29  ;;  %v1853_v22 = vld [vmem:[#allocation6 + $0x120] ss:$8 sps:$4 sm:$0xff]   ;;  %v1861_v24 = vld [vmem:[#allocation6 + $0x134] ss:$8 sps:$4 sm:$0xff]   ;;  %v1859_v26 = vld [vmem:[#allocation6 + $0x130] ss:$8 sps:$4 sm:$0xff]  }
  0x43   :  { %v1856_v23 = vld [vmem:[#allocation6 + $0x320] ss:$8 sps:$4 sm:$0xff]   ;;  %v1864_v25 = vld [vmem:[#allocation6 + $0x334] ss:$8 sps:$4 sm:$0xff]   ;;  %v1862_v27 = vld [vmem:[#allocation6 + $0x330] ss:$8 sps:$4 sm:$0xff]  }
  0x44   :  { %1076 = vmatpush1.bf16.msra.mxu1 %v1791_v30  ;;  %v1867_v28 = vld [vmem:[#allocation6 + $0x144] ss:$8 sps:$4 sm:$0xff]   ;;  %v1865_v30 = vld [vmem:[#allocation6 + $0x140] ss:$8 sps:$4 sm:$0xff]   ;;  %v1883_v48 = vld [vmem:[#allocation6 + $0x170] ss:$8 sps:$4 sm:$0xff]  }
  0x45   :  { %1162 = vmatpush1.bf16.msra.mxu0 %v1792_v31  ;;  %1077 = vmatprep.subr.bf16.mxu1 %v1793_v32  ;;  %v1870_v29 = vld [vmem:[#allocation6 + $0x344] ss:$8 sps:$4 sm:$0xff]   ;;  %v1868_v31 = vld [vmem:[#allocation6 + $0x340] ss:$8 sps:$4 sm:$0xff]   ;;  %v1873_v32 = vld [vmem:[#allocation6 + $0x154] ss:$8 sps:$4 sm:$0xff]  }
  0x46   :  { %1163 = vmatprep.subr.bf16.mxu0 %v1795_v33  ;;  %v1876_v33 = vld [vmem:[#allocation6 + $0x354] ss:$8 sps:$4 sm:$0xff]   ;;  %v1886_v49 = vld [vmem:[#allocation6 + $0x370] ss:$8 sps:$4 sm:$0xff]   ;;  %v1889_v52 = vld [vmem:[#allocation6 + $0x180] ss:$8 sps:$4 sm:$0xff]  }
  0x47   :  { %v1892_v53 = vld [vmem:[#allocation6 + $0x380] ss:$8 sps:$4 sm:$0xff]   ;;  %v1897_v54 = vld [vmem:[#allocation6 + $0x194] ss:$8 sps:$4 sm:$0xff]   ;;  %v1919_v8 = vld [vmem:[#allocation6 + $0x1d0] ss:$8 sps:$4 sm:$0xff]  }
  0x48   :  { %1078 = vmatpush1.bf16.msra.mxu1 %v1797_v34  ;;  %v1871_v34 = vld [vmem:[#allocation6 + $0x150] ss:$8 sps:$4 sm:$0xff]   ;;  %v1900_v55 = vld [vmem:[#allocation6 + $0x394] ss:$8 sps:$4 sm:$0xff]   ;;  %v1927_v10 = vld [vmem:[#allocation6 + $0x1e4] ss:$8 sps:$4 sm:$0xff]  }
  0x49   :  { %1164 = vmatpush1.bf16.msra.mxu0 %v1798_v35  ;;  %1079 = vmatprep.subr.bf16.mxu1 %v1799_v36  ;;  %v1874_v35 = vld [vmem:[#allocation6 + $0x350] ss:$8 sps:$4 sm:$0xff]   ;;  %v1879_v36 = vld [vmem:[#allocation6 + $0x164] ss:$8 sps:$4 sm:$0xff]   ;;  %v1921_v6 = vld [vmem:[#allocation6 + $0x1d4] ss:$8 sps:$4 sm:$0xff]  }
  0x4a   :  { %1165 = vmatprep.subr.bf16.mxu0 %v1801_v37  ;;  %v1882_v37 = vld [vmem:[#allocation6 + $0x364] ss:$8 sps:$4 sm:$0xff]   ;;  %v1922_v9 = vld [vmem:[#allocation6 + $0x3d0] ss:$8 sps:$4 sm:$0xff]  }
  0x4c   :  { %1080 = vmatpush1.bf16.msra.mxu1 %v1803_v38  ;;  %v1877_v38 = vld [vmem:[#allocation6 + $0x160] ss:$8 sps:$4 sm:$0xff]  }
  0x4d   :  { %1166 = vmatpush1.bf16.msra.mxu0 %v1804_v39  ;;  %1081 = vmatprep.subr.bf16.mxu1 %v1805_v40  ;;  %v1880_v39 = vld [vmem:[#allocation6 + $0x360] ss:$8 sps:$4 sm:$0xff]   ;;  %v1885_v40 = vld [vmem:[#allocation6 + $0x174] ss:$8 sps:$4 sm:$0xff]  }
  0x4e   :  { %1167 = vmatprep.subr.bf16.mxu0 %v1807_v41  ;;  %v62_v41 = vld [vmem:[#allocation4 + $0x18] sm:$0xff] }
  0x50   :  { %1082 = vmatpush1.bf16.msra.mxu1 %v1809_v42  ;;  %v72_v42 = vld [vmem:[#allocation4 + $0x68] sm:$0xff] }
  0x51   :  { %1168 = vmatpush1.bf16.msra.mxu0 %v1810_v43  ;;  %1083 = vmatprep.subr.bf16.mxu1 %v1811_v44  ;;  %v1888_v43 = vld [vmem:[#allocation6 + $0x374] ss:$8 sps:$4 sm:$0xff]   ;;  %v82_v44 = vpack.c.bf16 %v72_v42, %v62_v41  ;;  %v1958_v42 = vld [vmem:[#allocation6 + $0x470] ss:$8 sps:$4 sm:$0xff]  }
  0x52   :  { %1169 = vmatprep.subr.bf16.mxu0 %v1813_v45  ;;  %v66_v45 = vld [vmem:[#allocation4 + $0x38] sm:$0xff] }
  0x53   :  { %v1960_v41 = vld [vmem:[#allocation6 + $0x474] ss:$8 sps:$4 sm:$0xff]  }
  0x54   :  { %1084 = vmatpush1.bf16.msra.mxu1 %v1815_v46  ;;  %v76_v46 = vld [vmem:[#allocation4 + $0x88] sm:$0xff] }
  0x55   :  { %1170 = vmatpush1.bf16.msra.mxu0 %v1816_v47  ;;  %1085 = vmatprep.subr.bf16.mxu1 %v1817_v50  ;;  %v86_v47 = vpack.c.bf16 %v76_v46, %v66_v45  ;;  %v1891_v50 = vld [vmem:[#allocation6 + $0x184] ss:$8 sps:$4 sm:$0xff]   ;;  %v1966_v45 = vld [vmem:[#allocation6 + $0x494] ss:$8 sps:$4 sm:$0xff]   ;;  %v1964_v46 = vld [vmem:[#allocation6 + $0x490] ss:$8 sps:$4 sm:$0xff]  }
  0x56   :  { %1171 = vmatprep.subr.bf16.mxu0 %v1819_v51  ;;  %v1894_v51 = vld [vmem:[#allocation6 + $0x384] ss:$8 sps:$4 sm:$0xff]  }
  0x58   :  { %1086 = vmatpush1.bf16.msra.mxu1 %v1821_v56  ;;  %v1895_v56 = vld [vmem:[#allocation6 + $0x190] ss:$8 sps:$4 sm:$0xff]  }
  0x59   :  { %1172 = vmatpush1.bf16.msra.mxu0 %v1822_v57  ;;  %1087 = vmatprep.subr.bf16.mxu1 %v1823_v58  ;;  %v1898_v57 = vld [vmem:[#allocation6 + $0x390] ss:$8 sps:$4 sm:$0xff]   ;;  %v1903_v58 = vld [vmem:[#allocation6 + $0x1a4] ss:$8 sps:$4 sm:$0xff]  }
  0x5a   :  { %1173 = vmatprep.subr.bf16.mxu0 %v1825_v59  ;;  %v1906_v59 = vld [vmem:[#allocation6 + $0x3a4] ss:$8 sps:$4 sm:$0xff]  }
  0x5c   :  { %1088 = vmatpush1.bf16.msra.mxu1 %v1827_v60  ;;  %v1901_v60 = vld [vmem:[#allocation6 + $0x1a0] ss:$8 sps:$4 sm:$0xff]  }
  0x5d   :  { %1174 = vmatpush1.bf16.msra.mxu0 %v1828_v61  ;;  %1089 = vmatprep.subr.bf16.mxu1 %v1829_v62  ;;  %v1904_v61 = vld [vmem:[#allocation6 + $0x3a0] ss:$8 sps:$4 sm:$0xff]   ;;  %v1909_v62 = vld [vmem:[#allocation6 + $0x1b4] ss:$8 sps:$4 sm:$0xff]  }
  0x5e   :  { %1175 = vmatprep.subr.bf16.mxu0 %v1831_v63  ;;  %v1912_v63 = vld [vmem:[#allocation6 + $0x3b4] ss:$8 sps:$4 sm:$0xff]  }
  0x60   :  { %1090 = vmatpush1.bf16.msra.mxu1 %v1833_v0  ;;  %v1907_v0 = vld [vmem:[#allocation6 + $0x1b0] ss:$8 sps:$4 sm:$0xff]  }
  0x61   :  { %1176 = vmatpush1.bf16.msra.mxu0 %v1834_v1  ;;  %1091 = vmatprep.subr.bf16.mxu1 %v1835_v2  ;;  %v1910_v1 = vld [vmem:[#allocation6 + $0x3b0] ss:$8 sps:$4 sm:$0xff]   ;;  %v1915_v2 = vld [vmem:[#allocation6 + $0x1c4] ss:$8 sps:$4 sm:$0xff]  }
  0x62   :  { %1177 = vmatprep.subr.bf16.mxu0 %v1837_v3  ;;  %v1918_v3 = vld [vmem:[#allocation6 + $0x3c4] ss:$8 sps:$4 sm:$0xff]  }
  0x64   :  { %1092 = vmatpush1.bf16.msra.mxu1 %v1839_v4  ;;  %v1913_v4 = vld [vmem:[#allocation6 + $0x1c0] ss:$8 sps:$4 sm:$0xff]  }
  0x65   :  { %1178 = vmatpush1.bf16.msra.mxu0 %v1840_v5  ;;  %1104 = vmatprep.subr.bf16.mxu1 %v1843_v7  ;;  %v1916_v5 = vld [vmem:[#allocation6 + $0x3c0] ss:$8 sps:$4 sm:$0xff]   ;;  %v1924_v7 = vld [vmem:[#allocation6 + $0x3d4] ss:$8 sps:$4 sm:$0xff]  }
  0x66   :  { %1190 = vmatprep.subr.bf16.mxu0 %v1846_v11  ;;  %v1930_v11 = vld [vmem:[#allocation6 + $0x3e4] ss:$8 sps:$4 sm:$0xff]  }
  0x67   :  { %1094 = vmatmul.mubr.bf16.vlgmr.msra.gmra.mrb[0].mxu1 %v79_v14  ;;  %v1933_v14 = vld [vmem:[#allocation6 + $0x1f4] ss:$8 sps:$4 sm:$0xff]  }
  0x68   :  { %1180 = vmatmul.mubr.bf16.vlgmr.msra.gmra.mrb[0].mxu0 %v83_v15  ;;  %1105 = vmatpush1.bf16.msra.mxu1 %v1841_v12  ;;  %v1925_v12 = vld [vmem:[#allocation6 + $0x1e0] ss:$8 sps:$4 sm:$0xff]   ;;  %v1936_v15 = vld [vmem:[#allocation6 + $0x3f4] ss:$8 sps:$4 sm:$0xff]  }
  0x69   :  { %1191 = vmatpush1.bf16.msra.mxu0 %v1844_v13  ;;  %1106 = vmatprep.subr.bf16.mxu1 %v1849_v16  ;;  %v1928_v13 = vld [vmem:[#allocation6 + $0x3e0] ss:$8 sps:$4 sm:$0xff]   ;;  %v1931_v16 = vld [vmem:[#allocation6 + $0x1f0] ss:$8 sps:$4 sm:$0xff]  }
  0x6a   :  { %1192 = vmatprep.subr.bf16.mxu0 %v1852_v17  ;;  %1136 = vmatprep.mubr.bf16.mxu1 %v82_v44  ;;  %v1934_v17 = vld [vmem:[#allocation6 + $0x3f0] ss:$8 sps:$4 sm:$0xff]   ;;  %v1961_v44 = vld [vmem:[#allocation6 + $0x480] ss:$8 sps:$4 sm:$0xff]  }
  0x6b   :  { %1222 = vmatprep.mubr.bf16.mxu0 %v86_v47  ;;  %v1969_v47 = vld [vmem:[#allocation6 + $0x4a4] ss:$8 sps:$4 sm:$0xff]  }
  0x6c   :  { %1107 = vmatpush1.bf16.msra.mxu1 %v1847_v18  ;;  %v61_v18 = vld [vmem:[#allocation4 + $0x10] sm:$0xff] }
  0x6d   :  { %1193 = vmatpush1.bf16.msra.mxu0 %v1850_v19  ;;  %1108 = vmatprep.subr.bf16.mxu1 %v1855_v20  ;;  %v71_v19 = vld [vmem:[#allocation4 + $0x60] sm:$0xff]  ;;  %v65_v20 = vld [vmem:[#allocation4 + $0x30] sm:$0xff] }
  0x6e   :  { %1194 = vmatprep.subr.bf16.mxu0 %v1858_v21  ;;  %v75_v21 = vld [vmem:[#allocation4 + $0x80] sm:$0xff] }
  0x70   :  { %1109 = vmatpush1.bf16.msra.mxu1 %v1853_v22  ;;  %v1939_v22 = vld [vmem:[#allocation6 + $0x404] ss:$8 sps:$4 sm:$0xff]  }
  0x71   :  { %1195 = vmatpush1.bf16.msra.mxu0 %v1856_v23  ;;  %1110 = vmatprep.subr.bf16.mxu1 %v1861_v24  ;;  %v68_v23 = vld [vmem:[#allocation4 + $0x48] sm:$0xff]  ;;  %v78_v24 = vld [vmem:[#allocation4 + $0x98] sm:$0xff] }
  0x72   :  { %1196 = vmatprep.subr.bf16.mxu0 %v1864_v25  ;;  %v81_v25 = vpack.c.bf16 %v71_v19, %v61_v18  ;;  %v1292_v18 = vld [vmem:[%s2207_s3 + $0x70] sm:$0xff] }
  0x74   :  { %1111 = vmatpush1.bf16.msra.mxu1 %v1859_v26  ;;  %v85_v26 = vpack.c.bf16 %v75_v21, %v65_v20  ;;  %v1293_v20 = vld [vmem:[%s2207_s3 + $0x78] sm:$0xff] }
  0x75   :  { %1197 = vmatpush1.bf16.msra.mxu0 %v1862_v27  ;;  %1112 = vmatprep.subr.bf16.mxu1 %v1867_v28  ;;  %v1937_v27 = vld [vmem:[#allocation6 + $0x400] ss:$8 sps:$4 sm:$0xff]   ;;  %v88_v28 = vpack.c.bf16 %v78_v24, %v68_v23  ;;  %v1713_v21 = vpack.c.bf16 %v1293_v20, %v1292_v18 }
  0x76   :  { %1198 = vmatprep.subr.bf16.mxu0 %v1870_v29  ;;  %v1942_v29 = vld [vmem:[#allocation6 + $0x414] ss:$8 sps:$4 sm:$0xff]  }
  0x78   :  { %1113 = vmatpush1.bf16.msra.mxu1 %v1865_v30  ;;  %v1940_v30 = vld [vmem:[#allocation6 + $0x410] ss:$8 sps:$4 sm:$0xff]  }
  0x79   :  { %1199 = vmatpush1.bf16.msra.mxu0 %v1868_v31  ;;  %1114 = vmatprep.subr.bf16.mxu1 %v1873_v32  ;;  %v1945_v31 = vld [vmem:[#allocation6 + $0x424] ss:$8 sps:$4 sm:$0xff]   ;;  %v1943_v32 = vld [vmem:[#allocation6 + $0x420] ss:$8 sps:$4 sm:$0xff]  }
  0x7a   :  { %1200 = vmatprep.subr.bf16.mxu0 %v1876_v33  ;;  %v1948_v33 = vld [vmem:[#allocation6 + $0x434] ss:$8 sps:$4 sm:$0xff]  }
  0x7c   :  { %1115 = vmatpush1.bf16.msra.mxu1 %v1871_v34  ;;  %v1946_v34 = vld [vmem:[#allocation6 + $0x430] ss:$8 sps:$4 sm:$0xff]  }
  0x7d   :  { %1201 = vmatpush1.bf16.msra.mxu0 %v1874_v35  ;;  %1116 = vmatprep.subr.bf16.mxu1 %v1879_v36  ;;  %v1951_v35 = vld [vmem:[#allocation6 + $0x444] ss:$8 sps:$4 sm:$0xff]   ;;  %v1949_v36 = vld [vmem:[#allocation6 + $0x440] ss:$8 sps:$4 sm:$0xff]  }
  0x7e   :  { %1202 = vmatprep.subr.bf16.mxu0 %v1882_v37  ;;  %v1954_v37 = vld [vmem:[#allocation6 + $0x454] ss:$8 sps:$4 sm:$0xff]  }
  0x80   :  { %1117 = vmatpush1.bf16.msra.mxu1 %v1877_v38  ;;  %v1952_v38 = vld [vmem:[#allocation6 + $0x450] ss:$8 sps:$4 sm:$0xff]  }
  0x81   :  { %1203 = vmatpush1.bf16.msra.mxu0 %v1880_v39  ;;  %1118 = vmatprep.subr.bf16.mxu1 %v1885_v40  ;;  %v1957_v39 = vld [vmem:[#allocation6 + $0x464] ss:$8 sps:$4 sm:$0xff]   ;;  %v1955_v40 = vld [vmem:[#allocation6 + $0x460] ss:$8 sps:$4 sm:$0xff]  }
  0x82   :  { %1204 = vmatprep.subr.bf16.mxu0 %v1888_v43  ;;  %v1963_v43 = vld [vmem:[#allocation6 + $0x484] ss:$8 sps:$4 sm:$0xff]  }
  0x84   :  { %1119 = vmatpush1.bf16.msra.mxu1 %v1883_v48  ;;  %v1967_v48 = vld [vmem:[#allocation6 + $0x4a0] ss:$8 sps:$4 sm:$0xff]  }
  0x85   :  { %1205 = vmatpush1.bf16.msra.mxu0 %v1886_v49  ;;  %1120 = vmatprep.subr.bf16.mxu1 %v1891_v50  ;;  %v1972_v49 = vld [vmem:[#allocation6 + $0x4b4] ss:$8 sps:$4 sm:$0xff]   ;;  %v1970_v50 = vld [vmem:[#allocation6 + $0x4b0] ss:$8 sps:$4 sm:$0xff]  }
  0x86   :  { %1206 = vmatprep.subr.bf16.mxu0 %v1894_v51  ;;  %v1975_v51 = vld [vmem:[#allocation6 + $0x4c4] ss:$8 sps:$4 sm:$0xff]  }
  0x88   :  { %1121 = vmatpush1.bf16.msra.mxu1 %v1889_v52  ;;  %v1973_v52 = vld [vmem:[#allocation6 + $0x4c0] ss:$8 sps:$4 sm:$0xff]  }
  0x89   :  { %1207 = vmatpush1.bf16.msra.mxu0 %v1892_v53  ;;  %1122 = vmatprep.subr.bf16.mxu1 %v1897_v54  ;;  %v1978_v53 = vld [vmem:[#allocation6 + $0x4d4] ss:$8 sps:$4 sm:$0xff]   ;;  %v1976_v54 = vld [vmem:[#allocation6 + $0x4d0] ss:$8 sps:$4 sm:$0xff]  }
  0x8a   :  { %1208 = vmatprep.subr.bf16.mxu0 %v1900_v55  ;;  %v1981_v55 = vld [vmem:[#allocation6 + $0x4e4] ss:$8 sps:$4 sm:$0xff]  }
  0x8c   :  { %1123 = vmatpush1.bf16.msra.mxu1 %v1895_v56  ;;  %v1979_v56 = vld [vmem:[#allocation6 + $0x4e0] ss:$8 sps:$4 sm:$0xff]  }
  0x8d   :  { %1209 = vmatpush1.bf16.msra.mxu0 %v1898_v57  ;;  %1124 = vmatprep.subr.bf16.mxu1 %v1903_v58  ;;  %v1984_v57 = vld [vmem:[#allocation6 + $0x4f4] ss:$8 sps:$4 sm:$0xff]   ;;  %v1982_v58 = vld [vmem:[#allocation6 + $0x4f0] ss:$8 sps:$4 sm:$0xff]  }
  0x8e   :  { %1210 = vmatprep.subr.bf16.mxu0 %v1906_v59  ;;  %v67_v59 = vld [vmem:[#allocation4 + $0x40] sm:$0xff] }
  0x90   :  { %1125 = vmatpush1.bf16.msra.mxu1 %v1901_v60  ;;  %v77_v60 = vld [vmem:[#allocation4 + $0x90] sm:$0xff] }
  0x91   :  { %1211 = vmatpush1.bf16.msra.mxu0 %v1904_v61  ;;  %1126 = vmatprep.subr.bf16.mxu1 %v1909_v62  ;;  %v87_v61 = vpack.c.bf16 %v77_v60, %v67_v59  ;;  %v1278_v62 = vld [vmem:[%s2207_s3] sm:$0xff] }
  0x92   :  { %1212 = vmatprep.subr.bf16.mxu0 %v1912_v63  ;;  %v1279_v63 = vld [vmem:[%s2207_s3 + $0x8] sm:$0xff] }
  0x94   :  { %1127 = vmatpush1.bf16.msra.mxu1 %v1907_v0  ;;  %v1280_v0 = vld [vmem:[%s2207_s3 + $0x10] sm:$0xff] }
  0x95   :  { %1213 = vmatpush1.bf16.msra.mxu0 %v1910_v1  ;;  %1128 = vmatprep.subr.bf16.mxu1 %v1915_v2  ;;  %v1685_v1 = vpack.c.bf16 %v1279_v63, %v1278_v62  ;;  %v1281_v2 = vld [vmem:[%s2207_s3 + $0x18] sm:$0xff] }
  0x96   :  { %1214 = vmatprep.subr.bf16.mxu0 %v1918_v3  ;;  %v1689_v3 = vpack.c.bf16 %v1281_v2, %v1280_v0 }
  0x98   :  { %1129 = vmatpush1.bf16.msra.mxu1 %v1913_v4  ;;  %v1282_v4 = vld [vmem:[%s2207_s3 + $0x20] sm:$0xff] }
  0x99   :  { %1215 = vmatpush1.bf16.msra.mxu0 %v1916_v5  ;;  %1130 = vmatprep.subr.bf16.mxu1 %v1921_v6  ;;  %v1283_v5 = vld [vmem:[%s2207_s3 + $0x28] sm:$0xff] }
  0x9a   :  { %1216 = vmatprep.subr.bf16.mxu0 %v1924_v7  ;;  %v1693_v6 = vpack.c.bf16 %v1283_v5, %v1282_v4  ;;  %v1284_v7 = vld [vmem:[%s2207_s3 + $0x30] sm:$0xff] }
  0x9c   :  { %1131 = vmatpush1.bf16.msra.mxu1 %v1919_v8  ;;  %v1285_v8 = vld [vmem:[%s2207_s3 + $0x38] sm:$0xff] }
  0x9d   :  { %1217 = vmatpush1.bf16.msra.mxu0 %v1922_v9  ;;  %1132 = vmatprep.subr.bf16.mxu1 %v1927_v10  ;;  %v1697_v9 = vpack.c.bf16 %v1285_v8, %v1284_v7  ;;  %v1286_v10 = vld [vmem:[%s2207_s3 + $0x40] sm:$0xff] }
  0x9e   :  { %1218 = vmatprep.subr.bf16.mxu0 %v1930_v11  ;;  %v1287_v11 = vld [vmem:[%s2207_s3 + $0x48] sm:$0xff] }
  0xa0   :  { %1133 = vmatpush1.bf16.msra.mxu1 %v1925_v12  ;;  %v1701_v12 = vpack.c.bf16 %v1287_v11, %v1286_v10 }
  0xa1   :  { %1219 = vmatpush1.bf16.msra.mxu0 %v1928_v13  ;;  %1134 = vmatprep.subr.bf16.mxu1 %v1933_v14  ;;  %v1288_v13 = vld [vmem:[%s2207_s3 + $0x50] sm:$0xff]  ;;  %v1289_v14 = vld [vmem:[%s2207_s3 + $0x58] sm:$0xff] }
  0xa2   :  { %1220 = vmatprep.subr.bf16.mxu0 %v1936_v15  ;;  %v1705_v15 = vpack.c.bf16 %v1289_v14, %v1288_v13 }
  0xa4   :  { %1135 = vmatpush1.bf16.msra.mxu1 %v1931_v16  ;;  %v1290_v16 = vld [vmem:[%s2207_s3 + $0x60] sm:$0xff] }
  0xa5   :  { %1221 = vmatpush1.bf16.msra.mxu0 %v1934_v17  ;;  %1686 = vmatprep.subr.bf16.mxu1 %v1685_v1  ;;  %v1291_v17 = vld [vmem:[%s2207_s3 + $0x68] sm:$0xff] }
  0xa6   :  { %1233 = vmatprep.subr.bf16.mxu0 %v1939_v22  ;;  %v1709_v19 = vpack.c.bf16 %v1291_v17, %v1290_v16 }
  0xa7   :  { %1137 = vmatmul.mubr.bf16.vlgmr.msra.gmra.mrb[0].mxu1 %v81_v25 }
  0xa8   :  { %1223 = vmatmul.mubr.bf16.vlgmr.msra.gmra.mrb[0].mxu0 %v85_v26  ;;  %1688 = vmatpush3.bf16.msra.mxu1 %v1685_v1  ;;  %v251_v26 = vlaneseq }
  0xa9   :  { %1234 = vmatpush1.bf16.msra.mxu0 %v1937_v27  ;;  %1265 = vmatprep.mubr.bf16.mxu0 %v88_v28 }
  0xaa   :  { %1235 = vmatprep.subr.bf16.mxu0 %v1942_v29  ;;  %1690 = vmatprep.subr.bf16.mxu1 %v1689_v3  ;;  %v252_v27 = vshrl.u32 %v251_v26, 7  ;;  %v249_v29 = vld [vmem:[%s2206_s2] sm:$0x3] }
  0xac   :  { %1692 = vmatpush3.bf16.msra.mxu1 %v1689_v3  ;;  %v253_v28 = vsub.s32 0, %v252_v27 }
  0xad   :  { %1236 = vmatpush1.bf16.msra.mxu0 %v1940_v30  ;;  %1694 = vmatprep.subr.bf16.mxu1 %v1693_v6  ;;  %v257_v30 = vsub.s32 1, %v252_v27 }
  0xae   :  { %1237 = vmatprep.subr.bf16.mxu0 %v1945_v31  ;;  %v254_v31 = vrot.slane %v249_v29, %v253_v28 }
  0xb0   :  { %1696 = vmatpush3.bf16.msra.mxu1 %v1693_v6 }
  0xb1   :  { %1238 = vmatpush1.bf16.msra.mxu0 %v1943_v32  ;;  %1698 = vmatprep.subr.bf16.mxu1 %v1697_v9  ;;  %v258_v32 = vrot.slane %v249_v29, %v257_v30 }
  0xb2   :  { %1239 = vmatprep.subr.bf16.mxu0 %v1948_v33 }
  0xb4   :  { %1700 = vmatpush3.bf16.msra.mxu1 %v1697_v9 }
  0xb5   :  { %1240 = vmatpush1.bf16.msra.mxu0 %v1946_v34  ;;  %1702 = vmatprep.subr.bf16.mxu1 %v1701_v12 }
  0xb6   :  { %1241 = vmatprep.subr.bf16.mxu0 %v1951_v35 }
  0xb8   :  { %1704 = vmatpush3.bf16.msra.mxu1 %v1701_v12 }
  0xb9   :  { %1242 = vmatpush1.bf16.msra.mxu0 %v1949_v36  ;;  %1706 = vmatprep.subr.bf16.mxu1 %v1705_v15 }
  0xba   :  { %1243 = vmatprep.subr.bf16.mxu0 %v1954_v37 }
  0xbc   :  { %1708 = vmatpush3.bf16.msra.mxu1 %v1705_v15 }
  0xbd   :  { %1244 = vmatpush1.bf16.msra.mxu0 %v1952_v38  ;;  %1710 = vmatprep.subr.bf16.mxu1 %v1709_v19 }
  0xbe   :  { %1245 = vmatprep.subr.bf16.mxu0 %v1957_v39 }
  0xc0   :  { %1712 = vmatpush3.bf16.msra.mxu1 %v1709_v19 }
  0xc1   :  { %1246 = vmatpush1.bf16.msra.mxu0 %v1955_v40  ;;  %1714 = vmatprep.subr.bf16.mxu1 %v1713_v21 }
  0xc2   :  { %1247 = vmatprep.subr.bf16.mxu0 %v1960_v41 }
  0xc4   :  { %1716 = vmatpush3.bf16.msra.mxu1 %v1713_v21 }
  0xc5   :  { %1248 = vmatpush1.bf16.msra.mxu0 %v1958_v42 }
  0xc6   :  { %1249 = vmatprep.subr.bf16.mxu0 %v1963_v43 }
  0xc9   :  { %1250 = vmatpush1.bf16.msra.mxu0 %v1961_v44 }
  0xca   :  { %1251 = vmatprep.subr.bf16.mxu0 %v1966_v45 }
  0xcd   :  { %1252 = vmatpush1.bf16.msra.mxu0 %v1964_v46 }
  0xce   :  { %1253 = vmatprep.subr.bf16.mxu0 %v1969_v47  ;;  %v2053_v47 = vmov 0  }
  0xcf   :  { %1744 = vset.pattern.permute.xlu0 %v2053_v47 }
  0xd1   :  { %1254 = vmatpush1.bf16.msra.mxu0 %v1967_v48  ;;  %v1295_v48 = vstv %s2209_s5 }
  0xd2   :  { %1255 = vmatprep.subr.bf16.mxu0 %v1972_v49 }
  0xd5   :  { %1256 = vmatpush1.bf16.msra.mxu0 %v1970_v50 }
  0xd6   :  { %1257 = vmatprep.subr.bf16.mxu0 %v1975_v51 }
  0xd9   :  { %1258 = vmatpush1.bf16.msra.mxu0 %v1973_v52 }
  0xda   :  { %1259 = vmatprep.subr.bf16.mxu0 %v1978_v53 }
  0xdd   :  { %1260 = vmatpush1.bf16.msra.mxu0 %v1976_v54 }
  0xde   :  { %1261 = vmatprep.subr.bf16.mxu0 %v1981_v55 }
  0xe1   :  { %1262 = vmatpush1.bf16.msra.mxu0 %v1979_v56 }
  0xe2   :  { %1263 = vmatprep.subr.bf16.mxu0 %v1984_v57 }
  0xe5   :  { %1264 = vmatpush1.bf16.msra.mxu0 %v1982_v58 }
  0xe8   :  { %1266 = vmatmul.mubr.bf16.vlgmr.msra.gmra.mrb[0].mxu0 %v87_v61 }
 0x17a   :  { %v1138_v22 = vpop.f32.mrb[0].mxu1 }
 0x17b   :  { %v1140_v23 = vpop.f32.mrb[1].mxu1  ;;  %v1717_v33 = vadd.f32 %v1138_v22, %v254_v31 }
 0x17c   :  { %v1142_v24 = vpop.f32.mrb[2].mxu1  ;;  %v1719_v34 = vadd.f32 %v1140_v23, %v258_v32 }
 0x17d   :  { %v1144_v25 = vpop.f32.mrb[3].mxu1  ;;  %v1721_v36 = vadd.f32 %v1142_v24, %v254_v31  ;;  %v1631_v24 = vld [vmem:[%s2208_s4] ss:$0 sm:$0xff] }
 0x17e   :  { %v1723_v39 = vadd.f32 %v1144_v25, %v258_v32 }
 0x1bb   :  { %v1267_v35 = vpop.f32.mrb[0].mxu0 }
 0x1bc   :  { %v1718_v37 = vadd.f32 %v1717_v33, %v1267_v35  ;;  %v1269_v38 = vpop.f32.mrb[1].mxu0  ;;  %v1450_v35 = vstv %s2210_s6 }
 0x1bd   :  { %v1720_v40 = vadd.f32 %v1719_v34, %v1269_v38  ;;  %v1271_v41 = vpop.f32.mrb[2].mxu0 }
 0x1be   :  { %v1722_v42 = vadd.f32 %v1721_v36, %v1271_v41  ;;  %v1273_v43 = vpop.f32.mrb[3].mxu0 }
 0x1bf   :  { %1985 = vtanh.f32 %v1720_v40  ;;  %v1724_v44 = vadd.f32 %v1723_v39, %v1273_v43 }
 0x1c1   :  { %1987 = vtanh.f32 %v1724_v44 }
 0x1c9   :  { %v1986_v45 = vpop.eup %1985 }
 0x1ca   :  { %1682 = vmatprep.mubr.f32.mxu1 %v1986_v45 }
 0x1cb   :  { %v1988_v46 = vpop.eup %1987 }
 0x1cc   :  { %1683 = vmatmul.mubr.f32.vlgmr.msra.gmra.mrb[4].mxu1 %v1988_v46 }
 0x29f   :  { %v1684_v49 = vpop.f32.mrb[4].mxu1 }
 0x2a0   :  { %v1368_v50 = vadd.f32 %v1684_v49, %v1295_v48  ;;  %v1362_v51 = vpop.f32.mrb[5].mxu1 }
 0x2a1   :  { %v1363_v52 = vadd.f32 %v1362_v51, %v1295_v48 }
 0x2a2   :  { %v1630_v53 = vmul.f32 -1.442695, %v1368_v50 }
 0x2a3   :  { %v1629_v54 = vmul.f32 -1.442695, %v1363_v52 }
 0x2a4   :  { %1989 = vpow2.f32 %v1630_v53 }
 0x2a5   :  { %1991 = vpow2.f32 %v1629_v54 }
 0x2ae   :  { %v1990_v55 = vpop.eup %1989 }
 0x2af   :  { %v1992_v56 = vpop.eup %1991  ;;  %v1378_v57 = vadd.f32 1.0, %v1990_v55 }
 0x2b0   :  { %v1377_v58 = vadd.f32 1.0, %v1992_v56 }
 0x2b1   :  { %1993 = vrcp.f32 %v1378_v57 }
 0x2b2   :  { %1995 = vrcp.f32 %v1377_v58 }
 0x2bb   :  { %v1994_v59 = vpop.eup %1993 }
 0x2bc   :  { %v1996_v60 = vpop.eup %1995  ;;  %1393 = vperm.xlu0 %1744, %v1994_v59   ;;  %1385 = vst.msk [vmem:[%s2212_s8 + $0x8] sm:$0xff] %vm1383_vm0, %v1994_v59  ;;  %v1417_v61 = vsel %vm1383_vm0, %v1994_v59, 0.0 }
 0x2bd   :  { %v1418_v62 = vrot.slane %v1417_v61, 4  ;;  %1384 = vst.msk [vmem:[%s2212_s8] sm:$0xff] %vm1383_vm0, %v1996_v60  ;;  %v1410_v63 = vsel %vm1383_vm0, %v1996_v60, 0.0 }
 0x2be   :  { %v1411_v0 = vrot.slane %v1410_v63, 4 }
 0x2bf   :  { %v1419_v1 = vadd.f32 %v1418_v62, %v1417_v61 }
 0x2c0   :  { %1388 = vperm.xlu0 %1744, %v1996_v60   ;;  %v1412_v2 = vadd.f32 %v1411_v0, %v1410_v63 }
 0x2c1   :  { %v1420_v3 = vrot.slane %v1419_v1, 2 }
 0x2c2   :  { %v1413_v4 = vrot.slane %v1412_v2, 2 }
 0x2c3   :  { %v1421_v5 = vadd.f32 %v1420_v3, %v1419_v1 }
 0x2c4   :  { %v1414_v6 = vadd.f32 %v1413_v4, %v1412_v2 }
 0x2c5   :  { %v1422_v7 = vrot.slane %v1421_v5, 1 }
 0x2c6   :  { %v1415_v8 = vrot.slane %v1414_v6, 1 }
 0x2c7   :  { %v1423_v9 = vadd.f32 %v1422_v7, %v1421_v5 }
 0x2c8   :  { %v1416_v10 = vadd.f32 %v1415_v8, %v1414_v6 }
 0x2ca   :  { %v1445_v11 = vsel %vm1436_vm1, %v1423_v9, %v1416_v10 }
 0x2cb   :  { %1454 = vst.msk [vmem:[%s2213_s9] sm:$0x3] %vm1452_vm2, %v1445_v11  ;;  %1997 = vrcp.f32 %v1445_v11 }
 0x2d5   :  { %v1998_v34 = vpop.eup %1997 }
 0x33b   :  { %v1394_v12 = vpop.permute.xlu0 %1393 }
 0x33c   :  { %v1397_v13 = vmul.f32 %v1722_v42, %v1394_v12 }
 0x33e   :  { %v1404_v14 = vrot.slane %v1397_v13, 4 }
 0x33f   :  { %v1389_v15 = vpop.permute.xlu0 %1388 }
 0x340   :  { %v1405_v16 = vadd.f32 %v1404_v14, %v1397_v13  ;;  %v1396_v17 = vmul.f32 %v1718_v37, %v1389_v15 }
 0x342   :  { %v1406_v18 = vrot.slane %v1405_v16, 2  ;;  %v1398_v19 = vrot.slane %v1396_v17, 4 }
 0x344   :  { %v1407_v20 = vadd.f32 %v1406_v18, %v1405_v16  ;;  %v1399_v21 = vadd.f32 %v1398_v19, %v1396_v17 }
 0x346   :  { %v1408_v22 = vrot.slane %v1407_v20, 1  ;;  %v1400_v23 = vrot.slane %v1399_v21, 2 }
 0x348   :  { %v1409_v25 = vadd.f32 %v1408_v22, %v1407_v20  ;;  %v1401_v26 = vadd.f32 %v1400_v23, %v1399_v21 }
 0x34a   :  { %v1402_v27 = vrot.slane %v1401_v26, 1  ;;  %v1432_v28 = vmul.f32 %v1631_v24, %v1409_v25 }
 0x34c   :  { %v1403_v29 = vadd.f32 %v1402_v27, %v1401_v26  ;;  %v1435_v31 = vrot.slane %v1432_v28, 7 }
 0x34e   :  { %v1431_v30 = vmul.f32 %v1631_v24, %v1403_v29 }
 0x350   :  { %v1437_v32 = vsel %vm1436_vm1, %v1435_v31, %v1431_v30 }
 0x351   :  { %v1440_v33 = vsel %vm1439_vm3, %v1437_v32, 0.0 }
 0x352   :  { %1441 = vadd.xlane.f32.xlu1 %v1440_v33 }
 0x3df   :  { %v1442_v36 = vpop.xlane.xlu1 %1441 }
 0x3e0   :  { %v1448_v37 = vmul.f32 %v1998_v34, %v1442_v36 }
 0x3e2   :  { %v1451_v38 = vadd.f32 %v1450_v35, %v1448_v37 }
 0x3e4   :  { %1453 = vst.msk [vmem:[%s2211_s7] sm:$0x3] %vm1452_vm2, %v1451_v38 }
 0x3e5   :  { %1467 = vsyncpa [#allocation5], 1 }
 0x3e6   :  { %1468 = vsyncpa [#allocation7], 1 }

</bundles_post_ra>
